<compile_context>
chip_gen: v7x
topology: tpu7x:2x2x1
jax: 0.10.0
libtpu: 0.0.40
codegen_flags: <defaults>
</compile_context>

<pallas_src>
import numpy as np
import jax
import jax.numpy as jnp
from jax.experimental import pallas as pl
from jax.experimental.pallas import tpu as pltpu


# ----------------------------------------------------------------------------
# VMEM budgets (generation-aware when the hardware is queryable)
# ----------------------------------------------------------------------------
def _physical_vmem_bytes():
    try:
        return int(pltpu.get_tpu_info().vmem_capacity_bytes)
    except Exception:
        return 64 << 20  # conservative (v7x-sized) fallback


_VMEM_PHYS = _physical_vmem_bytes()
# Scoped VMEM limit requested per kernel; leave headroom for compiler scratch.
_VMEM_LIMIT = int(min(96 << 20, (_VMEM_PHYS * 3) // 4))
# Byte budget for the sum of all *double-buffered* blocks of one grid step.
_BLOCK_BUDGET = _VMEM_LIMIT // 2


def _round_down(x, m):
    return max(m, (x // m) * m)


def _pick_lane_tile(hw, bytes_per_lane, budget=None, max_lanes=16384):
    """Lane (last-dim) tile: multiple of 128 (or the full extent when small),
    sized so double-buffered blocks stay under `budget` bytes."""
    budget = _BLOCK_BUDGET if budget is None else budget
    if hw <= 256:
        return hw                                   # block == full dim (legal)
    t = budget // max(int(bytes_per_lane), 1)
    t = int(min(t, max_lanes, hw))
    if t < 128:
        return 128
    return _round_down(t, 128)


def _pick_plane_batch(n_planes, bytes_per_plane, budget=None, max_batch=32):
    """Leading-dim plane batch, capped so (a) blocks fit the VMEM budget,
    (b) the unrolled per-plane loop stays small, (c) the grid has >= 2 steps
    (keeps both v7x TensorCores busy on a 'parallel' axis)."""
    budget = _BLOCK_BUDGET if budget is None else budget
    b = budget // max(int(bytes_per_plane), 1)
    b = int(min(b, max_batch, n_planes))
    if n_planes >= 2:
        b = min(b, pl.cdiv(n_planes, 2))
    return max(1, b)


# ----------------------------------------------------------------------------
# Kernel 1: base(x) == 1x1 conv, NCHW-native (no transposes around the call)
#   out[n, k, hw_tile] = w[:, k] . x[n, :, hw_tile] + b[k]
# ----------------------------------------------------------------------------
def _conv1x1_kernel(x_ref, w_ref, b_ref, o_ref):
    x = x_ref[0]                                    # (C, T)
    w = w_ref[...]                                  # (C, K)
    o = jax.lax.dot_general(
        w, x, (((0,), (0,)), ((), ())),             # w.T @ x -> (K, T)
        preferred_element_type=jnp.float32)
    o_ref[0] = o + b_ref[...]                       # (K, 1) broadcasts over lanes


def conv1x1(x_nchw, w, b):
    """base(x). x: (N, C, H, W) f32 -> logits (N, K, H, W) f32 (NCHW-native)."""
    N, C, H, W = x_nchw.shape
    K = w.shape[1]
    HW = H * W
    # Double-buffered input + output bytes per output lane (pixel).
    T = _pick_lane_tile(HW, 2 * (C + K) * 4)
    if N == 1 and HW > 256 and T >= HW:
        T = _round_down(pl.cdiv(HW, 2), 128)        # keep >= 2 parallel steps
    x_flat = x_nchw.reshape(N, C, HW)               # contiguous, free reshape
    b_col = b.reshape(K, 1)
    out = pl.pallas_call(
        _conv1x1_kernel,
        out_shape=jax.ShapeDtypeStruct((N, K, HW), jnp.float32),
        grid=(N, pl.cdiv(HW, T)),
        in_specs=[
            pl.BlockSpec((1, C, T), lambda n, t: (n, 0, t)),
            pl.BlockSpec((C, K), lambda n, t: (0, 0)),
            pl.BlockSpec((K, 1), lambda n, t: (0, 0)),
        ],
        out_specs=pl.BlockSpec((1, K, T), lambda n, t: (n, 0, t)),
        compiler_params=pltpu.CompilerParams(
            dimension_semantics=("parallel", "parallel"),
            vmem_limit_bytes=_VMEM_LIMIT),
    )(x_flat, w, b_col)
    return out.reshape(N, K, H, W)


# ----------------------------------------------------------------------------
# Kernel 2: fused multi-scale resize + max over all scales (single HBM pass).
#   For each plane i of the block:
#     out_max[i] = max(x[i], A_s @ x[i] @ Bt_s  for every scale s)
#   (optionally also emitting each per-scale map for the training path).
# ----------------------------------------------------------------------------
def _make_msc_kernel(n_scales, n_planes, emit_pyramid):
    def kernel(*refs):
        x_ref = refs[0]                                        # (B, H, W) f32
        a_refs = [refs[1 + 2 * s] for s in range(n_scales)]    # (H, H)
        bt_refs = [refs[2 + 2 * s] for s in range(n_scales)]   # (W, W)
        out_refs = refs[1 + 2 * n_scales:]
        o_max = out_refs[0]
        # Hoist + cast the resize matrices once per grid step (bf16 MXU path).
        a_mats = [a_refs[s][...].astype(jnp.bfloat16) for s in range(n_scales)]
        bt_mats = [bt_refs[s][...].astype(jnp.bfloat16) for s in range(n_scales)]
        for i in range(n_planes):                               # unrolled
            xi = x_ref[i]                                       # (H, W) f32
            xi_b = xi.astype(jnp.bfloat16)
            acc = xi
            for s in range(n_scales):
                # Per-plane 2-D matmuls: direct-layout stores, no batched
                # 'oh,bht->bot' relayout; f32 accumulation on the MXU.
                t = jnp.dot(xi_b, bt_mats[s],
                            preferred_element_type=jnp.float32)        # (H, W)
                u = jnp.dot(a_mats[s], t.astype(jnp.bfloat16),
                            preferred_element_type=jnp.float32)        # (H, W)
                if emit_pyramid:
                    out_refs[1 + s][i] = u
                acc = jnp.maximum(acc, u)                       # f32 VPU max
            o_max[i] = acc
    return kernel


def msc_fused_resize_max(logits, mats, emit_pyramid):
    """outs[0] = max(logits, A_s @ logits @ Bt_s); outs[1:] = per-scale maps."""
    N, K, H, W = logits.shape
    S = len(mats)
    P = N * K
    n_out = 1 + (S if emit_pyramid else 0)
    # Per-plane double-buffered block bytes: input plane + every output plane.
    per_plane = 2 * (1 + n_out) * H * W * 4
    # Fixed overhead of the (double-buffered) resize matrices.
    mat_bytes = 2 * sum(int(a.size) + int(bt.size) for a, bt in mats) * 4
    B = _pick_plane_batch(P, per_plane,
                          budget=max(_BLOCK_BUDGET - mat_bytes, per_plane))
    planes = logits.reshape(P, H, W)

    kernel = _make_msc_kernel(S, B, emit_pyramid)
    in_specs = [pl.BlockSpec((B, H, W), lambda i: (i, 0, 0))]
    operands = [planes]
    for a, bt in mats:
        in_specs.append(pl.BlockSpec(a.shape, lambda i: (0, 0)))
        in_specs.append(pl.BlockSpec(bt.shape, lambda i: (0, 0)))
        operands += [a, bt]
    out_shape = tuple(jax.ShapeDtypeStruct((P, H, W), jnp.float32)
                      for _ in range(n_out))
    out_specs = tuple(pl.BlockSpec((B, H, W), lambda i: (i, 0, 0))
                      for _ in range(n_out))

    outs = pl.pallas_call(
        kernel,
        out_shape=out_shape,
        grid=(pl.cdiv(P, B),),
        in_specs=in_specs,
        out_specs=out_specs,
        compiler_params=pltpu.CompilerParams(
            dimension_semantics=("parallel",),
            vmem_limit_bytes=_VMEM_LIMIT),
    )(*operands)
    if not isinstance(outs, (list, tuple)):
        outs = (outs,)
    return [o.reshape(N, K, H, W) for o in outs]


# ----------------------------------------------------------------------------
# PyTorch-matching bilinear interpolation matrices (align_corners=False)
# ----------------------------------------------------------------------------
def interp_matrix(out_size, in_size, scale_factor=None):
    """Row-stochastic 2-tap bilinear matrix R (out_size, in_size).

    Matches F.interpolate(mode='bilinear', align_corners=False): with
    scale_factor given, coordinates use 1/scale_factor; with `size` given they
    use in_size/out_size.  src = (dst + 0.5) * ratio - 0.5, clamped at 0.
    """
    ratio = (1.0 / scale_factor) if scale_factor is not None else (in_size / out_size)
    R = np.zeros((out_size, in_size), dtype=np.float32)
    for d in range(out_size):
        src = max((d + 0.5) * ratio - 0.5, 0.0)
        i0 = min(int(np.floor(src)), in_size - 1)
        i1 = min(i0 + 1, in_size - 1)
        frac = src - i0
        R[d, i0] += 1.0 - frac
        R[d, i1] += frac
    return R


def _effective_resize_mats(H, W, p):
    """Composed up(down(.)) operators: plane' = A @ plane @ Bt (both (H,H)/(W,W))."""
    Hp, Wp = int(np.floor(H * p)), int(np.floor(W * p))
    rh_d = interp_matrix(Hp, H, scale_factor=p)     # (Hp, H)
    rw_d = interp_matrix(Wp, W, scale_factor=p)     # (Wp, W)
    rh_u = interp_matrix(H, Hp)                     # (H, Hp)
    rw_u = interp_matrix(W, Wp)                     # (W, Wp)
    a = rh_u @ rh_d                                 # (H, H)
    bt = (rw_u @ rw_d).T                            # (W, W), applied as plane @ bt
    return jnp.asarray(a), jnp.asarray(bt)


# ----------------------------------------------------------------------------
# MSC forward (eval returns logits_max; training returns the list)
# ----------------------------------------------------------------------------
def msc_forward(x, w, b, scales=(0.5, 0.75), training=False):
    # TODO(synk): the PyTorch branch where `scales` is not a list (fresh random
    # scales drawn per call) is not reproduced in-kernel; pass an explicit
    # static tuple of scales instead.
    N, C, H, W = x.shape
    logits = conv1x1(x, w, b)                       # (N, K, H, W)

    if not scales:
        return [logits, logits] if training else logits

    # base is a 1x1 conv (pointwise-linear + bias) and the bilinear resize is
    # row-stochastic, so base(resize(x)) == resize(base(x)) exactly; composing
    # down+up matrices turns every pyramid branch into A_s @ logits @ Bt_s on
    # K channels, fused with the max into a single HBM pass over logits.
    mats = [_effective_resize_mats(H, W, p) for p in scales]
    outs = msc_fused_resize_max(logits, mats, emit_pyramid=training)
    if training:
        logits_max, pyramid = outs[0], outs[1:]
        return [logits] + list(pyramid) + [logits_max]
    return outs[0]


# ----------------------------------------------------------------------------
# Pure-JAX reference in the ORIGINAL operation order (conv of resized input),
# highest precision, for the numerical self-check.
# ----------------------------------------------------------------------------
def _reference(x, w, b, scales):
    hp = jax.lax.Precision.HIGHEST
    N, C, H, W = x.shape

    def conv(t):
        return jnp.einsum('nchw,ck->nkhw', t, w, precision=hp) + b.reshape(1, -1, 1, 1)

    def resize(t, rh, rwt):
        return jnp.einsum('oh,nchw,wt->ncot', rh, t, rwt, precision=hp)

    outs = [conv(x)]
    for p in scales:
        Hp, Wp = int(np.floor(H * p)), int(np.floor(W * p))
        rh_d = jnp.asarray(interp_matrix(Hp, H, scale_factor=p))
        rw_d = jnp.asarray(interp_matrix(Wp, W, scale_factor=p))
        lp = conv(resize(x, rh_d, rw_d.T))
        rh_u = jnp.asarray(interp_matrix(H, Hp))
        rw_u = jnp.asarray(interp_matrix(W, Wp))
        outs.append(resize(lp, rh_u, rw_u.T))
    return jnp.max(jnp.stack(outs, axis=0), axis=0)


if __name__ == "__main__":
    # Deterministic synthetic parameters / inputs (small shapes).
    N, C_IN, H, W = 2, 4, 16, 16
    N_CLASSES = 8
    SCALES = (0.5, 0.75)

    key = jax.random.PRNGKey(0)
    kx, kw, kb = jax.random.split(key, 3)
    x = jax.random.normal(kx, (N, C_IN, H, W), dtype=jnp.float32)
    w = jax.random.normal(kw, (C_IN, N_CLASSES), dtype=jnp.float32) * 0.1  # 1x1-conv weight
    b = jax.random.normal(kb, (1, N_CLASSES), dtype=jnp.float32) * 0.1     # bias

    fwd = jax.jit(msc_forward, static_argnames=("scales", "training"))
    out = jax.block_until_ready(fwd(x, w, b, scales=SCALES, training=False))
    assert out.shape == (N, N_CLASSES, H, W), out.shape

    ref = jax.block_until_ready(_reference(x, w, b, SCALES))
    assert bool(jnp.all(jnp.isfinite(out)))
    max_err = float(jnp.max(jnp.abs(out - ref)))
    assert bool(jnp.allclose(out, ref, atol=1e-2, rtol=1e-2)), max_err

    # Exercise the training path once: [logits, up_s..., logits_max].
    tr = jax.block_until_ready(fwd(x, w, b, scales=SCALES, training=True))
    assert len(tr) == len(SCALES) + 2
    assert tr[-1].shape == out.shape
    assert bool(jnp.allclose(tr[-1], out, atol=1e-5, rtol=1e-5))

    print("KERNEL_OK")
</pallas_src>

<mosaic_0001>
module attributes {stable_mosaic.version = 11 : i64} {
  func.func @_conv1x1_kernel(%arg0: i32, %arg1: i32, %arg2: memref<1x4x256xf32, #tpu.memory_space<vmem>>, %arg3: memref<4x8xf32, #tpu.memory_space<vmem>>, %arg4: memref<8x1xf32, #tpu.memory_space<vmem>>, %arg5: memref<1x8x256xf32, #tpu.memory_space<vmem>>) attributes {dimension_semantics = [#tpu.dimension_semantics<parallel>, #tpu.dimension_semantics<parallel>], iteration_bounds = array<i64: 2, 1>, scalar_prefetch = 0 : i64, scratch_operands = 0 : i64, tpu.core_type = #tpu.core_type<tc>, window_params = [{transform_indices = @transform_0, window_bounds = array<i64: 1, 4, 256>}, {pipeline_mode = #tpu.pipeline_mode<synchronous>, transform_indices = @transform_1, window_bounds = array<i64: 4, 8>}, {pipeline_mode = #tpu.pipeline_mode<synchronous>, transform_indices = @transform_2, window_bounds = array<i64: 8, 1>}, {transform_indices = @transform_3, window_bounds = array<i64: 1, 8, 256>}]} {
    %c0 = arith.constant 0 : index
    %c0_0 = arith.constant 0 : index
    %c0_1 = arith.constant 0 : index
    %0 = vector.load %arg2[%c0, %c0_0, %c0_1] : memref<1x4x256xf32, #tpu.memory_space<vmem>>, vector<1x4x256xf32>
    %1 = vector.shape_cast %0 : vector<1x4x256xf32> to vector<4x256xf32>
    %c0_2 = arith.constant 0 : index
    %c0_3 = arith.constant 0 : index
    %2 = vector.load %arg3[%c0_2, %c0_3] : memref<4x8xf32, #tpu.memory_space<vmem>>, vector<4x8xf32>
    %cst = arith.constant dense<0.000000e+00> : vector<8x256xf32>
    %3 = tpu.matmul %2, %1, %cst {dimension_numbers = #tpu.dot_dimension_numbers<[0], [0], [1], [1], [0, 1, 1, 1], [], []>} : vector<4x8xf32>, vector<4x256xf32>, vector<8x256xf32> -> vector<8x256xf32>
    %c0_4 = arith.constant 0 : index
    %c0_5 = arith.constant 0 : index
    %4 = vector.load %arg4[%c0_4, %c0_5] : memref<8x1xf32, #tpu.memory_space<vmem>>, vector<8x1xf32>
    %5 = vector.broadcast %4 : vector<8x1xf32> to vector<8x256xf32>
    %6 = arith.addf %3, %5 : vector<8x256xf32>
    %c0_6 = arith.constant 0 : index
    %c0_7 = arith.constant 0 : index
    %c0_8 = arith.constant 0 : index
    %7 = vector.load %arg5[%c0_6, %c0_7, %c0_8] : memref<1x8x256xf32, #tpu.memory_space<vmem>>, vector<1x8x256xf32>
    %8 = vector.shape_cast %7 : vector<1x8x256xf32> to vector<8x256xf32>
    %9 = vector.shape_cast %6 : vector<8x256xf32> to vector<1x8x256xf32>
    tpu.vector_store %arg5[%c0_6, %c0_7, %c0_8], %9 {strides = array<i32>} : memref<1x8x256xf32, #tpu.memory_space<vmem>>, vector<1x8x256xf32>,
    return
  }
  func.func @transform_0(%arg0: i32, %arg1: i32) -> (i32, i32, i32) {
    %c0_i32 = arith.constant 0 : i32
    %c0_i32_0 = arith.constant 0 : i32
    return %arg0, %c0_i32, %arg1 : i32, i32, i32
  }
  func.func @transform_1(%arg0: i32, %arg1: i32) -> (i32, i32) {
    %c0_i32 = arith.constant 0 : i32
    %c0_i32_0 = arith.constant 0 : i32
    %c0_i32_1 = arith.constant 0 : i32
    return %c0_i32, %c0_i32_0 : i32, i32
  }
  func.func @transform_2(%arg0: i32, %arg1: i32) -> (i32, i32) {
    %c0_i32 = arith.constant 0 : i32
    %c0_i32_0 = arith.constant 0 : i32
    %c0_i32_1 = arith.constant 0 : i32
    return %c0_i32, %c0_i32_0 : i32, i32
  }
  func.func @transform_3(%arg0: i32, %arg1: i32) -> (i32, i32, i32) {
    %c0_i32 = arith.constant 0 : i32
    %c0_i32_0 = arith.constant 0 : i32
    return %arg0, %c0_i32, %arg1 : i32, i32, i32
  }
}

module attributes {stable_mosaic.version = 11 : i64} {
  func.func @kernel(%arg0: i32, %arg1: memref<8x16x16xf32, #tpu.memory_space<vmem>>, %arg2: memref<16x16xf32, #tpu.memory_space<vmem>>, %arg3: memref<16x16xf32, #tpu.memory_space<vmem>>, %arg4: memref<16x16xf32, #tpu.memory_space<vmem>>, %arg5: memref<16x16xf32, #tpu.memory_space<vmem>>, %arg6: memref<8x16x16xf32, #tpu.memory_space<vmem>>) attributes {dimension_semantics = [#tpu.dimension_semantics<parallel>], iteration_bounds = array<i64: 2>, scalar_prefetch = 0 : i64, scratch_operands = 0 : i64, tpu.core_type = #tpu.core_type<tc>, window_params = [{transform_indices = @transform_0, window_bounds = array<i64: 8, 16, 16>}, {pipeline_mode = #tpu.pipeline_mode<synchronous>, transform_indices = @transform_1, window_bounds = array<i64: 16, 16>}, {pipeline_mode = #tpu.pipeline_mode<synchronous>, transform_indices = @transform_2, window_bounds = array<i64: 16, 16>}, {pipeline_mode = #tpu.pipeline_mode<synchronous>, transform_indices = @transform_3, window_bounds = array<i64: 16, 16>}, {pipeline_mode = #tpu.pipeline_mode<synchronous>, transform_indices = @transform_4, window_bounds = array<i64: 16, 16>}, {transform_indices = @transform_5, window_bounds = array<i64: 8, 16, 16>}]} {
    %c0 = arith.constant 0 : index
    %c0_0 = arith.constant 0 : index
    %0 = vector.load %arg2[%c0, %c0_0] : memref<16x16xf32, #tpu.memory_space<vmem>>, vector<16x16xf32>
    %1 = arith.truncf %0 : vector<16x16xf32> to vector<16x16xbf16>
    %c0_1 = arith.constant 0 : index
    %c0_2 = arith.constant 0 : index
    %2 = vector.load %arg4[%c0_1, %c0_2] : memref<16x16xf32, #tpu.memory_space<vmem>>, vector<16x16xf32>
    %3 = arith.truncf %2 : vector<16x16xf32> to vector<16x16xbf16>
    %c0_3 = arith.constant 0 : index
    %c0_4 = arith.constant 0 : index
    %4 = vector.load %arg3[%c0_3, %c0_4] : memref<16x16xf32, #tpu.memory_space<vmem>>, vector<16x16xf32>
    %5 = arith.truncf %4 : vector<16x16xf32> to vector<16x16xbf16>
    %c0_5 = arith.constant 0 : index
    %c0_6 = arith.constant 0 : index
    %6 = vector.load %arg5[%c0_5, %c0_6] : memref<16x16xf32, #tpu.memory_space<vmem>>, vector<16x16xf32>
    %7 = arith.truncf %6 : vector<16x16xf32> to vector<16x16xbf16>
    %c0_7 = arith.constant 0 : index
    %c0_8 = arith.constant 0 : index
    %c0_9 = arith.constant 0 : index
    %8 = vector.load %arg1[%c0_7, %c0_8, %c0_9] : memref<8x16x16xf32, #tpu.memory_space<vmem>>, vector<1x16x16xf32>
    %9 = vector.shape_cast %8 : vector<1x16x16xf32> to vector<16x16xf32>
    %10 = arith.truncf %9 : vector<16x16xf32> to vector<16x16xbf16>
    %cst = arith.constant dense<0.000000e+00> : vector<16x16xf32>
    %11 = tpu.matmul %10, %5, %cst {dimension_numbers = #tpu.dot_dimension_numbers<[1], [0], [0], [1], [0, 0, 1, 1], [], []>} : vector<16x16xbf16>, vector<16x16xbf16>, vector<16x16xf32> -> vector<16x16xf32>
    %12 = arith.truncf %11 : vector<16x16xf32> to vector<16x16xbf16>
    %cst_10 = arith.constant dense<0.000000e+00> : vector<16x16xf32>
    %13 = tpu.matmul %1, %12, %cst_10 {dimension_numbers = #tpu.dot_dimension_numbers<[1], [0], [0], [1], [0, 0, 1, 1], [], []>} : vector<16x16xbf16>, vector<16x16xbf16>, vector<16x16xf32> -> vector<16x16xf32>
    %14 = arith.maximumf %9, %13 : vector<16x16xf32>
    %cst_11 = arith.constant dense<0.000000e+00> : vector<16x16xf32>
    %15 = tpu.matmul %10, %7, %cst_11 {dimension_numbers = #tpu.dot_dimension_numbers<[1], [0], [0], [1], [0, 0, 1, 1], [], []>} : vector<16x16xbf16>, vector<16x16xbf16>, vector<16x16xf32> -> vector<16x16xf32>
    %16 = arith.truncf %15 : vector<16x16xf32> to vector<16x16xbf16>
    %cst_12 = arith.constant dense<0.000000e+00> : vector<16x16xf32>
    %17 = tpu.matmul %3, %16, %cst_12 {dimension_numbers = #tpu.dot_dimension_numbers<[1], [0], [0], [1], [0, 0, 1, 1], [], []>} : vector<16x16xbf16>, vector<16x16xbf16>, vector<16x16xf32> -> vector<16x16xf32>
    %18 = arith.maximumf %14, %17 : vector<16x16xf32>
    %c0_13 = arith.constant 0 : index
    %c0_14 = arith.constant 0 : index
    %c0_15 = arith.constant 0 : index
    %19 = vector.load %arg6[%c0_13, %c0_14, %c0_15] : memref<8x16x16xf32, #tpu.memory_space<vmem>>, vector<1x16x16xf32>
    %20 = vector.shape_cast %19 : vector<1x16x16xf32> to vector<16x16xf32>
    %21 = vector.shape_cast %18 : vector<16x16xf32> to vector<1x16x16xf32>
    tpu.vector_store %arg6[%c0_13, %c0_14, %c0_15], %21 {strides = array<i32>} : memref<8x16x16xf32, #tpu.memory_space<vmem>>, vector<1x16x16xf32>,
    %c1 = arith.constant 1 : index
    %c0_16 = arith.constant 0 : index
    %c0_17 = arith.constant 0 : index
    %22 = vector.load %arg1[%c1, %c0_16, %c0_17] : memref<8x16x16xf32, #tpu.memory_space<vmem>>, vector<1x16x16xf32>
    %23 = vector.shape_cast %22 : vector<1x16x16xf32> to vector<16x16xf32>
    %24 = arith.truncf %23 : vector<16x16xf32> to vector<16x16xbf16>
    %cst_18 = arith.constant dense<0.000000e+00> : vector<16x16xf32>
    %25 = tpu.matmul %24, %5, %cst_18 {dimension_numbers = #tpu.dot_dimension_numbers<[1], [0], [0], [1], [0, 0, 1, 1], [], []>} : vector<16x16xbf16>, vector<16x16xbf16>, vector<16x16xf32> -> vector<16x16xf32>
    %26 = arith.truncf %25 : vector<16x16xf32> to vector<16x16xbf16>
    %cst_19 = arith.constant dense<0.000000e+00> : vector<16x16xf32>
    %27 = tpu.matmul %1, %26, %cst_19 {dimension_numbers = #tpu.dot_dimension_numbers<[1], [0], [0], [1], [0, 0, 1, 1], [], []>} : vector<16x16xbf16>, vector<16x16xbf16>, vector<16x16xf32> -> vector<16x16xf32>
    %28 = arith.maximumf %23, %27 : vector<16x16xf32>
    %cst_20 = arith.constant dense<0.000000e+00> : vector<16x16xf32>
    %29 = tpu.matmul %24, %7, %cst_20 {dimension_numbers = #tpu.dot_dimension_numbers<[1], [0], [0], [1], [0, 0, 1, 1], [], []>} : vector<16x16xbf16>, vector<16x16xbf16>, vector<16x16xf32> -> vector<16x16xf32>
    %30 = arith.truncf %29 : vector<16x16xf32> to vector<16x16xbf16>
    %cst_21 = arith.constant dense<0.000000e+00> : vector<16x16xf32>
    %31 = tpu.matmul %3, %30, %cst_21 {dimension_numbers = #tpu.dot_dimension_numbers<[1], [0], [0], [1], [0, 0, 1, 1], [], []>} : vector<16x16xbf16>, vector<16x16xbf16>, vector<16x16xf32> -> vector<16x16xf32>
    %32 = arith.maximumf %28, %31 : vector<16x16xf32>
    %c1_22 = arith.constant 1 : index
    %c0_23 = arith.constant 0 : index
    %c0_24 = arith.constant 0 : index
    %33 = vector.load %arg6[%c1_22, %c0_23, %c0_24] : memref<8x16x16xf32, #tpu.memory_space<vmem>>, vector<1x16x16xf32>
    %34 = vector.shape_cast %33 : vector<1x16x16xf32> to vector<16x16xf32>
    %35 = vector.shape_cast %32 : vector<16x16xf32> to vector<1x16x16xf32>
    tpu.vector_store %arg6[%c1_22, %c0_23, %c0_24], %35 {strides = array<i32>} : memref<8x16x16xf32, #tpu.memory_space<vmem>>, vector<1x16x16xf32>,
    %c2 = arith.constant 2 : index
    %c0_25 = arith.constant 0 : index
    %c0_26 = arith.constant 0 : index
    %36 = vector.load %arg1[%c2, %c0_25, %c0_26] : memref<8x16x16xf32, #tpu.memory_space<vmem>>, vector<1x16x16xf32>
    %37 = vector.shape_cast %36 : vector<1x16x16xf32> to vector<16x16xf32>
    %38 = arith.truncf %37 : vector<16x16xf32> to vector<16x16xbf16>
    %cst_27 = arith.constant dense<0.000000e+00> : vector<16x16xf32>
    %39 = tpu.matmul %38, %5, %cst_27 {dimension_numbers = #tpu.dot_dimension_numbers<[1], [0], [0], [1], [0, 0, 1, 1], [], []>} : vector<16x16xbf16>, vector<16x16xbf16>, vector<16x16xf32> -> vector<16x16xf32>
    %40 = arith.truncf %39 : vector<16x16xf32> to vector<16x16xbf16>
    %cst_28 = arith.constant dense<0.000000e+00> : vector<16x16xf32>
    %41 = tpu.matmul %1, %40, %cst_28 {dimension_numbers = #tpu.dot_dimension_numbers<[1], [0], [0], [1], [0, 0, 1, 1], [], []>} : vector<16x16xbf16>, vector<16x16xbf16>, vector<16x16xf32> -> vector<16x16xf32>
    %42 = arith.maximumf %37, %41 : vector<16x16xf32>
    %cst_29 = arith.constant dense<0.000000e+00> : vector<16x16xf32>
    %43 = tpu.matmul %38, %7, %cst_29 {dimension_numbers = #tpu.dot_dimension_numbers<[1], [0], [0], [1], [0, 0, 1, 1], [], []>} : vector<16x16xbf16>, vector<16x16xbf16>, vector<16x16xf32> -> vector<16x16xf32>
    %44 = arith.truncf %43 : vector<16x16xf32> to vector<16x16xbf16>
    %cst_30 = arith.constant dense<0.000000e+00> : vector<16x16xf32>
    %45 = tpu.matmul %3, %44, %cst_30 {dimension_numbers = #tpu.dot_dimension_numbers<[1], [0], [0], [1], [0, 0, 1, 1], [], []>} : vector<16x16xbf16>, vector<16x16xbf16>, vector<16x16xf32> -> vector<16x16xf32>
    %46 = arith.maximumf %42, %45 : vector<16x16xf32>
    %c2_31 = arith.constant 2 : index
    %c0_32 = arith.constant 0 : index
    %c0_33 = arith.constant 0 : index
    %47 = vector.load %arg6[%c2_31, %c0_32, %c0_33] : memref<8x16x16xf32, #tpu.memory_space<vmem>>, vector<1x16x16xf32>
    %48 = vector.shape_cast %47 : vector<1x16x16xf32> to vector<16x16xf32>
    %49 = vector.shape_cast %46 : vector<16x16xf32> to vector<1x16x16xf32>
    tpu.vector_store %arg6[%c2_31, %c0_32, %c0_33], %49 {strides = array<i32>} : memref<8x16x16xf32, #tpu.memory_space<vmem>>, vector<1x16x16xf32>,
    %c3 = arith.constant 3 : index
    %c0_34 = arith.constant 0 : index
    %c0_35 = arith.constant 0 : index
    %50 = vector.load %arg1[%c3, %c0_34, %c0_35] : memref<8x16x16xf32, #tpu.memory_space<vmem>>, vector<1x16x16xf32>
    %51 = vector.shape_cast %50 : vector<1x16x16xf32> to vector<16x16xf32>
    %52 = arith.truncf %51 : vector<16x16xf32> to vector<16x16xbf16>
    %cst_36 = arith.constant dense<0.000000e+00> : vector<16x16xf32>
    %53 = tpu.matmul %52, %5, %cst_36 {dimension_numbers = #tpu.dot_dimension_numbers<[1], [0], [0], [1], [0, 0, 1, 1], [], []>} : vector<16x16xbf16>, vector<16x16xbf16>, vector<16x16xf32> -> vector<16x16xf32>
    %54 = arith.truncf %53 : vector<16x16xf32> to vector<16x16xbf16>
    %cst_37 = arith.constant dense<0.000000e+00> : vector<16x16xf32>
    %55 = tpu.matmul %1, %54, %cst_37 {dimension_numbers = #tpu.dot_dimension_numbers<[1], [0], [0], [1], [0, 0, 1, 1], [], []>} : vector<16x16xbf16>, vector<16x16xbf16>, vector<16x16xf32> -> vector<16x16xf32>
    %56 = arith.maximumf %51, %55 : vector<16x16xf32>
    %cst_38 = arith.constant dense<0.000000e+00> : vector<16x16xf32>
    %57 = tpu.matmul %52, %7, %cst_38 {dimension_numbers = #tpu.dot_dimension_numbers<[1], [0], [0], [1], [0, 0, 1, 1], [], []>} : vector<16x16xbf16>, vector<16x16xbf16>, vector<16x16xf32> -> vector<16x16xf32>
    %58 = arith.truncf %57 : vector<16x16xf32> to vector<16x16xbf16>
    %cst_39 = arith.constant dense<0.000000e+00> : vector<16x16xf32>
    %59 = tpu.matmul %3, %58, %cst_39 {dimension_numbers = #tpu.dot_dimension_numbers<[1], [0], [0], [1], [0, 0, 1, 1], [], []>} : vector<16x16xbf16>, vector<16x16xbf16>, vector<16x16xf32> -> vector<16x16xf32>
    %60 = arith.maximumf %56, %59 : vector<16x16xf32>
    %c3_40 = arith.constant 3 : index
    %c0_41 = arith.constant 0 : index
    %c0_42 = arith.constant 0 : index
    %61 = vector.load %arg6[%c3_40, %c0_41, %c0_42] : memref<8x16x16xf32, #tpu.memory_space<vmem>>, vector<1x16x16xf32>
    %62 = vector.shape_cast %61 : vector<1x16x16xf32> to vector<16x16xf32>
    %63 = vector.shape_cast %60 : vector<16x16xf32> to vector<1x16x16xf32>
    tpu.vector_store %arg6[%c3_40, %c0_41, %c0_42], %63 {strides = array<i32>} : memref<8x16x16xf32, #tpu.memory_space<vmem>>, vector<1x16x16xf32>,
    %c4 = arith.constant 4 : index
    %c0_43 = arith.constant 0 : index
    %c0_44 = arith.constant 0 : index
    %64 = vector.load %arg1[%c4, %c0_43, %c0_44] : memref<8x16x16xf32, #tpu.memory_space<vmem>>, vector<1x16x16xf32>
    %65 = vector.shape_cast %64 : vector<1x16x16xf32> to vector<16x16xf32>
    %66 = arith.truncf %65 : vector<16x16xf32> to vector<16x16xbf16>
    %cst_45 = arith.constant dense<0.000000e+00> : vector<16x16xf32>
    %67 = tpu.matmul %66, %5, %cst_45 {dimension_numbers = #tpu.dot_dimension_numbers<[1], [0], [0], [1], [0, 0, 1, 1], [], []>} : vector<16x16xbf16>, vector<16x16xbf16>, vector<16x16xf32> -> vector<16x16xf32>
    %68 = arith.truncf %67 : vector<16x16xf32> to vector<16x16xbf16>
    %cst_46 = arith.constant dense<0.000000e+00> : vector<16x16xf32>
    %69 = tpu.matmul %1, %68, %cst_46 {dimension_numbers = #tpu.dot_dimension_numbers<[1], [0], [0], [1], [0, 0, 1, 1], [], []>} : vector<16x16xbf16>, vector<16x16xbf16>, vector<16x16xf32> -> vector<16x16xf32>
    %70 = arith.maximumf %65, %69 : vector<16x16xf32>
    %cst_47 = arith.constant dense<0.000000e+00> : vector<16x16xf32>
    %71 = tpu.matmul %66, %7, %cst_47 {dimension_numbers = #tpu.dot_dimension_numbers<[1], [0], [0], [1], [0, 0, 1, 1], [], []>} : vector<16x16xbf16>, vector<16x16xbf16>, vector<16x16xf32> -> vector<16x16xf32>
    %72 = arith.truncf %71 : vector<16x16xf32> to vector<16x16xbf16>
    %cst_48 = arith.constant dense<0.000000e+00> : vector<16x16xf32>
    %73 = tpu.matmul %3, %72, %cst_48 {dimension_numbers = #tpu.dot_dimension_numbers<[1], [0], [0], [1], [0, 0, 1, 1], [], []>} : vector<16x16xbf16>, vector<16x16xbf16>, vector<16x16xf32> -> vector<16x16xf32>
    %74 = arith.maximumf %70, %73 : vector<16x16xf32>
    %c4_49 = arith.constant 4 : index
    %c0_50 = arith.constant 0 : index
    %c0_51 = arith.constant 0 : index
    %75 = vector.load %arg6[%c4_49, %c0_50, %c0_51] : memref<8x16x16xf32, #tpu.memory_space<vmem>>, vector<1x16x16xf32>
    %76 = vector.shape_cast %75 : vector<1x16x16xf32> to vector<16x16xf32>
    %77 = vector.shape_cast %74 : vector<16x16xf32> to vector<1x16x16xf32>
    tpu.vector_store %arg6[%c4_49, %c0_50, %c0_51], %77 {strides = array<i32>} : memref<8x16x16xf32, #tpu.memory_space<vmem>>, vector<1x16x16xf32>,
    %c5 = arith.constant 5 : index
    %c0_52 = arith.constant 0 : index
    %c0_53 = arith.constant 0 : index
    %78 = vector.load %arg1[%c5, %c0_52, %c0_53] : memref<8x16x16xf32, #tpu.memory_space<vmem>>, vector<1x16x16xf32>
    %79 = vector.shape_cast %78 : vector<1x16x16xf32> to vector<16x16xf32>
    %80 = arith.truncf %79 : vector<16x16xf32> to vector<16x16xbf16>
    %cst_54 = arith.constant dense<0.000000e+00> : vector<16x16xf32>
    %81 = tpu.matmul %80, %5, %cst_54 {dimension_numbers = #tpu.dot_dimension_numbers<[1], [0], [0], [1], [0, 0, 1, 1], [], []>} : vector<16x16xbf16>, vector<16x16xbf16>, vector<16x16xf32> -> vector<16x16xf32>
    %82 = arith.truncf %81 : vector<16x16xf32> to vector<16x16xbf16>
    %cst_55 = arith.constant dense<0.000000e+00> : vector<16x16xf32>
    %83 = tpu.matmul %1, %82, %cst_55 {dimension_numbers = #tpu.dot_dimension_numbers<[1], [0], [0], [1], [0, 0, 1, 1], [], []>} : vector<16x16xbf16>, vector<16x16xbf16>, vector<16x16xf32> -> vector<16x16xf32>
    %84 = arith.maximumf %79, %83 : vector<16x16xf32>
    %cst_56 = arith.constant dense<0.000000e+00> : vector<16x16xf32>
    %85 = tpu.matmul %80, %7, %cst_56 {dimension_numbers = #tpu.dot_dimension_numbers<[1], [0], [0], [1], [0, 0, 1, 1], [], []>} : vector<16x16xbf16>, vector<16x16xbf16>, vector<16x16xf32> -> vector<16x16xf32>
    %86 = arith.truncf %85 : vector<16x16xf32> to vector<16x16xbf16>
    %cst_57 = arith.constant dense<0.000000e+00> : vector<16x16xf32>
    %87 = tpu.matmul %3, %86, %cst_57 {dimension_numbers = #tpu.dot_dimension_numbers<[1], [0], [0], [1], [0, 0, 1, 1], [], []>} : vector<16x16xbf16>, vector<16x16xbf16>, vector<16x16xf32> -> vector<16x16xf32>
    %88 = arith.maximumf %84, %87 : vector<16x16xf32>
    %c5_58 = arith.constant 5 : index
    %c0_59 = arith.constant 0 : index
    %c0_60 = arith.constant 0 : index
    %89 = vector.load %arg6[%c5_58, %c0_59, %c0_60] : memref<8x16x16xf32, #tpu.memory_space<vmem>>, vector<1x16x16xf32>
    %90 = vector.shape_cast %89 : vector<1x16x16xf32> to vector<16x16xf32>
    %91 = vector.shape_cast %88 : vector<16x16xf32> to vector<1x16x16xf32>
    tpu.vector_store %arg6[%c5_58, %c0_59, %c0_60], %91 {strides = array<i32>} : memref<8x16x16xf32, #tpu.memory_space<vmem>>, vector<1x16x16xf32>,
    %c6 = arith.constant 6 : index
    %c0_61 = arith.constant 0 : index
    %c0_62 = arith.constant 0 : index
    %92 = vector.load %arg1[%c6, %c0_61, %c0_62] : memref<8x16x16xf32, #tpu.memory_space<vmem>>, vector<1x16x16xf32>
    %93 = vector.shape_cast %92 : vector<1x16x16xf32> to vector<16x16xf32>
    %94 = arith.truncf %93 : vector<16x16xf32> to vector<16x16xbf16>
    %cst_63 = arith.constant dense<0.000000e+00> : vector<16x16xf32>
    %95 = tpu.matmul %94, %5, %cst_63 {dimension_numbers = #tpu.dot_dimension_numbers<[1], [0], [0], [1], [0, 0, 1, 1], [], []>} : vector<16x16xbf16>, vector<16x16xbf16>, vector<16x16xf32> -> vector<16x16xf32>
    %96 = arith.truncf %95 : vector<16x16xf32> to vector<16x16xbf16>
    %cst_64 = arith.constant dense<0.000000e+00> : vector<16x16xf32>
    %97 = tpu.matmul %1, %96, %cst_64 {dimension_numbers = #tpu.dot_dimension_numbers<[1], [0], [0], [1], [0, 0, 1, 1], [], []>} : vector<16x16xbf16>, vector<16x16xbf16>, vector<16x16xf32> -> vector<16x16xf32>
    %98 = arith.maximumf %93, %97 : vector<16x16xf32>
    %cst_65 = arith.constant dense<0.000000e+00> : vector<16x16xf32>
    %99 = tpu.matmul %94, %7, %cst_65 {dimension_numbers = #tpu.dot_dimension_numbers<[1], [0], [0], [1], [0, 0, 1, 1], [], []>} : vector<16x16xbf16>, vector<16x16xbf16>, vector<16x16xf32> -> vector<16x16xf32>
    %100 = arith.truncf %99 : vector<16x16xf32> to vector<16x16xbf16>
    %cst_66 = arith.constant dense<0.000000e+00> : vector<16x16xf32>
    %101 = tpu.matmul %3, %100, %cst_66 {dimension_numbers = #tpu.dot_dimension_numbers<[1], [0], [0], [1], [0, 0, 1, 1], [], []>} : vector<16x16xbf16>, vector<16x16xbf16>, vector<16x16xf32> -> vector<16x16xf32>
    %102 = arith.maximumf %98, %101 : vector<16x16xf32>
    %c6_67 = arith.constant 6 : index
    %c0_68 = arith.constant 0 : index
    %c0_69 = arith.constant 0 : index
    %103 = vector.load %arg6[%c6_67, %c0_68, %c0_69] : memref<8x16x16xf32, #tpu.memory_space<vmem>>, vector<1x16x16xf32>
    %104 = vector.shape_cast %103 : vector<1x16x16xf32> to vector<16x16xf32>
    %105 = vector.shape_cast %102 : vector<16x16xf32> to vector<1x16x16xf32>
    tpu.vector_store %arg6[%c6_67, %c0_68, %c0_69], %105 {strides = array<i32>} : memref<8x16x16xf32, #tpu.memory_space<vmem>>, vector<1x16x16xf32>,
    %c7 = arith.constant 7 : index
    %c0_70 = arith.constant 0 : index
    %c0_71 = arith.constant 0 : index
    %106 = vector.load %arg1[%c7, %c0_70, %c0_71] : memref<8x16x16xf32, #tpu.memory_space<vmem>>, vector<1x16x16xf32>
    %107 = vector.shape_cast %106 : vector<1x16x16xf32> to vector<16x16xf32>
    %108 = arith.truncf %107 : vector<16x16xf32> to vector<16x16xbf16>
    %cst_72 = arith.constant dense<0.000000e+00> : vector<16x16xf32>
    %109 = tpu.matmul %108, %5, %cst_72 {dimension_numbers = #tpu.dot_dimension_numbers<[1], [0], [0], [1], [0, 0, 1, 1], [], []>} : vector<16x16xbf16>, vector<16x16xbf16>, vector<16x16xf32> -> vector<16x16xf32>
    %110 = arith.truncf %109 : vector<16x16xf32> to vector<16x16xbf16>
    %cst_73 = arith.constant dense<0.000000e+00> : vector<16x16xf32>
    %111 = tpu.matmul %1, %110, %cst_73 {dimension_numbers = #tpu.dot_dimension_numbers<[1], [0], [0], [1], [0, 0, 1, 1], [], []>} : vector<16x16xbf16>, vector<16x16xbf16>, vector<16x16xf32> -> vector<16x16xf32>
    %112 = arith.maximumf %107, %111 : vector<16x16xf32>
    %cst_74 = arith.constant dense<0.000000e+00> : vector<16x16xf32>
    %113 = tpu.matmul %108, %7, %cst_74 {dimension_numbers = #tpu.dot_dimension_numbers<[1], [0], [0], [1], [0, 0, 1, 1], [], []>} : vector<16x16xbf16>, vector<16x16xbf16>, vector<16x16xf32> -> vector<16x16xf32>
    %114 = arith.truncf %113 : vector<16x16xf32> to vector<16x16xbf16>
    %cst_75 = arith.constant dense<0.000000e+00> : vector<16x16xf32>
    %115 = tpu.matmul %3, %114, %cst_75 {dimension_numbers = #tpu.dot_dimension_numbers<[1], [0], [0], [1], [0, 0, 1, 1], [], []>} : vector<16x16xbf16>, vector<16x16xbf16>, vector<16x16xf32> -> vector<16x16xf32>
    %116 = arith.maximumf %112, %115 : vector<16x16xf32>
    %c7_76 = arith.constant 7 : index
    %c0_77 = arith.constant 0 : index
    %c0_78 = arith.constant 0 : index
    %117 = vector.load %arg6[%c7_76, %c0_77, %c0_78] : memref<8x16x16xf32, #tpu.memory_space<vmem>>, vector<1x16x16xf32>
    %118 = vector.shape_cast %117 : vector<1x16x16xf32> to vector<16x16xf32>
    %119 = vector.shape_cast %116 : vector<16x16xf32> to vector<1x16x16xf32>
    tpu.vector_store %arg6[%c7_76, %c0_77, %c0_78], %119 {strides = array<i32>} : memref<8x16x16xf32, #tpu.memory_space<vmem>>, vector<1x16x16xf32>,
    return
  }
  func.func @transform_0(%arg0: i32) -> (i32, i32, i32) {
    %c0_i32 = arith.constant 0 : i32
    %c0_i32_0 = arith.constant 0 : i32
    %c0_i32_1 = arith.constant 0 : i32
    return %arg0, %c0_i32, %c0_i32_0 : i32, i32, i32
  }
  func.func @transform_1(%arg0: i32) -> (i32, i32) {
    %c0_i32 = arith.constant 0 : i32
    %c0_i32_0 = arith.constant 0 : i32
    %c0_i32_1 = arith.constant 0 : i32
    return %c0_i32, %c0_i32_0 : i32, i32
  }
  func.func @transform_2(%arg0: i32) -> (i32, i32) {
    %c0_i32 = arith.constant 0 : i32
    %c0_i32_0 = arith.constant 0 : i32
    %c0_i32_1 = arith.constant 0 : i32
    return %c0_i32, %c0_i32_0 : i32, i32
  }
  func.func @transform_3(%arg0: i32) -> (i32, i32) {
    %c0_i32 = arith.constant 0 : i32
    %c0_i32_0 = arith.constant 0 : i32
    %c0_i32_1 = arith.constant 0 : i32
    return %c0_i32, %c0_i32_0 : i32, i32
  }
  func.func @transform_4(%arg0: i32) -> (i32, i32) {
    %c0_i32 = arith.constant 0 : i32
    %c0_i32_0 = arith.constant 0 : i32
    %c0_i32_1 = arith.constant 0 : i32
    return %c0_i32, %c0_i32_0 : i32, i32
  }
  func.func @transform_5(%arg0: i32) -> (i32, i32, i32) {
    %c0_i32 = arith.constant 0 : i32
    %c0_i32_0 = arith.constant 0 : i32
    %c0_i32_1 = arith.constant 0 : i32
    return %arg0, %c0_i32, %c0_i32_0 : i32, i32, i32
  }
}

</mosaic_0001>

<bundles_post_ra>
// kernel: msc_forward.2
= control target key start
LH: loop header
LB: loop body
LE: loop exit
PB: predicated region body
PF: predicated region fallthrough
CT: control target
= control target key end

     0   :  { %s511_s12 = smov 0   ;;  %s513_s13 = smov 0   ;;  %s550_s0 = inlined_call_operand.vmem [shape: f32[2,4,256], index: 0, kind: input, shape index: {}]   ;;  %s551_s1 = inlined_call_operand.vmem [shape: f32[4,8], index: 1, kind: input, shape index: {}]   ;;  %s552_s2 = inlined_call_operand.vmem [shape: f32[8,1], index: 2, kind: input, shape index: {}]   ;;  %s553_s3 = inlined_call_operand.vmem [shape: f32[2,8,256], index: 3, kind: output, shape index: {}]  }
   0x1   :  { %s515_s14 = smov 0  }
   0x2 LB: > { %s25_s15 = sadd.s32 1, %s483_s13  ;;  %p425_p0 = scmp.ge.s32.totalorder %s487_s14, 1  ;;  %s487_s14 = sphi %s515_s14, %s13_s14   ;;  %s483_s13 = sphi %s513_s13, %s555_s13   ;;  %s479_s12 = sphi %s511_s12, %s554_s12  }
   0x3   : > { %p27_p1 = scmp.ge.s32.totalorder %s25_s15, 2  ;;  %p158_p2 = scmp.lt.s32.totalorder %s487_s14, 3 }
   0x5   : > { %s557_s15 = smov (%p27_p1, %s25_s15), 0  ;;  %p159_p3 = pnand %p425_p0, %p158_p2 }
   0x6   : > { %v211_v0 = vld [vmem:[%s551_s1] sm:$0xf] (!%p159_p3)  ;;  %p191_p4 = scmp.lt.s32.totalorder (!%p159_p3), %s479_s12, 1  ;;  %v489_v1 = vmov (!%p159_p3), 0.0   ;;  %vm256_vm0 = vcmask (!%p159_p3), 1043456   ;;  %v490_v5 = vmov (!%p159_p3), 0  }
   0x7   : > { %162 = sbr.rel (%p159_p3) target bundleno = 352 (0x160), region = 32  ;;  %218 = vxpose.xlu0.b32.start.end [1/1] (short) (narrow) (!%p159_p3), %v211_v0, 8  ;;  %325 = vmatprep.mubr.f32.mxu0 (!%p159_p3), %v489_v1  ;;  %v212_v4 = vld [vmem:[%s552_s2] sm:$0xff] (!%p159_p3)  ;;  %vm252_vm1 = vcmask (!%p159_p3), 31744  }
   0xe   : > { %s559_s12 = smov (!%p191_p4, %s479_s12), 1 }
   0xf   : > { %s435_s18 = sshll.u32 %s559_s12, 3  ;;  %s436_s24 = sshll.u32 %s559_s12, 4 }
  0x10   : > { %s198_s21 = scalar_lea.vmem %s550_s0, %s435_s18  ;;  %s208_s27 = scalar_lea.vmem %s553_s3, %s436_s24 }
  0x11   : > { %v210_v2 = vld [vmem:[%s198_s21] sm:$0xff] }
  0x12   : > { %v251_v3 = vcombine.high %v210_v2, %v210_v2 }
  0x14   : > { %430 = vmatprep.subr.msk.mxu0 %vm256_vm0, %v251_v3 }
  0x15   : > { %431 = vmatpush1.msk.msra.mxu0 %vm256_vm0, %v210_v2 }
  0x30   : > { %463 = vset.pattern.permute.xlu0 %v490_v5 }
  0x31   : > { %215 = vperm.xlu0 %463, %v212_v4  }
  0x87   : > { %v234_v6 = vpop.trf.xlu0 }
  0x88   : > { %432 = vmatmul.mubr.msk.f32.vlgmr.msra.gmra.mrb[0].mxu0 %vm252_vm1, %v234_v6 }
  0xb0   : > { %v216_v7 = vpop.permute.xlu0 %215 }
 0x15b   : > { %v327_v8 = vpop.f32.mrb[0].mxu0 }
 0x15c   : > { %v328_v9 = vadd.f32 %v327_v8, %v216_v7  ;;  %v329_v10 = vpop.f32.mrb[1].mxu0 }
 0x15d   : > { %v330_v11 = vadd.f32 %v329_v10, %v216_v7 }
 0x15e   : > { %332 = vst [vmem:[%s208_s27] sm:$0xff] %v328_v9 }
 0x15f   : > { %333 = vst [vmem:[%s208_s27 + $0x8] sm:$0xff] %v330_v11 }
 0x160 PF: > { %s13_s14 = sadd.s32 1, %s487_s14   ;;  %s554_s12 = smov %s483_s13 }
 0x161   : > { %p10_p5 = scmp.ge.s32.totalorder %s13_s14, 4   ;;  %s555_s13 = smov %s557_s15 }
 0x163   :  { %12 = sbr.rel (!%p10_p5) target bundleno = 2 (0x2), region = 62 }

// kernel: msc_forward.3
= control target key start
LH: loop header
LB: loop body
LE: loop exit
PB: predicated region body
PF: predicated region fallthrough
CT: control target
= control target key end

     0   :  { %10 = vsyncpa [#allocation3], 0  ;;  %s2654_s0 = inlined_call_operand.vmem [shape: f32[16,16,16], index: 0, kind: input, shape index: {}]   ;;  %s2655_s1 = inlined_call_operand.vmem [shape: f32[16,16], index: 1, kind: input, shape index: {}]   ;;  %s2656_s2 = inlined_call_operand.vmem [shape: f32[16,16], index: 2, kind: input, shape index: {}]   ;;  %s2657_s3 = inlined_call_operand.vmem [shape: f32[16,16], index: 3, kind: input, shape index: {}]   ;;  %s2658_s4 = inlined_call_operand.vmem [shape: f32[16,16], index: 4, kind: input, shape index: {}]   ;;  %s2659_s5 = inlined_call_operand.hbm [shape: f32[16,16,16], index: 5, kind: output, shape index: {}]  }
   0x1   :  { %12 = vsyncpa [#allocation3 + $0x1], 0  ;;  %s2239_s18 = smov 0   ;;  %s2241_s19 = smov 0  }
   0x2   :  { %s2243_s20 = smov 0   ;;  %s2245_s21 = smov 0  }
   0x3 LB: > { %s2260_s22 = sadd.s32 4294967295, %s2202_s21   ;;  %s1764_s23 = sadd.s32 4294967294, %s2202_s21   ;;  %s2202_s21 = sphi %s2245_s21, %s2665_s21   ;;  %s2198_s20 = sphi %s2243_s20, %s2664_s20   ;;  %s2194_s19 = sphi %s2241_s19, %s2663_s19   ;;  %s2190_s18 = sphi %s2239_s18, %s2662_s18  }
   0x4   : > { %s2264_s24 = sadd.s32 1, %s2202_s21   ;;  %s135_s25 = sadd.s32 1, %s2198_s20 }
   0x5   : > { %s132_s26 = ssub.s32 %s2202_s21, %s2264_s24  ;;  %p145_p0 = scmp.ne.s32.totalorder %s2198_s20, %s2194_s19 }
   0x6   : > { %p133_p1 = scmp.eq.s32.totalorder %s132_s26, 0  ;;  %p146_p2 = scmp.eq.s32.totalorder %s2260_s22, 1 }
   0x7   : > { %p151_p3 = scmp.ne.s32.totalorder %s2194_s19, %s2190_s18  ;;  %p152_p4 = scmp.eq.s32.totalorder %s1764_s23, 1 }
   0x8   : > { %s2275_s27 = scalar_select %p133_p1, %s2198_s20, %s135_s25  }
   0x9   : > { %p2277_p5 = por %p146_p2, %p145_p0  ;;  %p2281_p6 = por %p152_p4, %p151_p3 }
   0xa   : > { %p1767_p7 = scmp.ge.s32.totalorder %s2202_s21, 1  ;;  %p192_p8 = scmp.lt.s32.totalorder %s2202_s21, 3 }
   0xc   : > { %p193_p9 = pnand %p1767_p7, %p192_p8 }
   0xd   : > { %v236_v0 = vld [vmem:[%s2656_s2] sm:$0xff] (!%p193_p9)  ;;  %v237_v1 = vld [vmem:[%s2656_s2 + $0x8] sm:$0xff] (!%p193_p9)  ;;  %s1769_s9 = sshll.u32 (!%p193_p9), %s2260_s22, 3  ;;  %v2204_v2 = vmov (!%p193_p9), 0.0   ;;  %vm2205_vm0 = vmmov (!%p193_p9), 0   ;;  %vm245_vm1 = vcmask (!%p193_p9), 130048  }
   0xe   : > { %196 = sbr.rel (%p193_p9) target bundleno = 597 (0x255), region = 40  ;;  %1905 = vmatprep.subr.bf16.mxu0 (!%p193_p9), %v2204_v2  ;;  %v2295_v3 = vpack.c.bf16 (!%p193_p9), %v237_v1, %v236_v0  ;;  %1907 = vmatprep.mubr.msk.bf16.mxu0 (!%p193_p9), %vm2205_vm0, %v2204_v2  ;;  %p222_p10 = scmp.lt.s32.totalorder (!%p193_p9), %s1769_s9, 15  ;;  %v239_v4 = vld [vmem:[%s2658_s4] sm:$0xff] (!%p193_p9)  ;;  %v240_v5 = vld [vmem:[%s2658_s4 + $0x8] sm:$0xff] (!%p193_p9) }
   0xf   : > { %1911 = vmatprep.subr.bf16.mxu1 (!%p193_p9), %v2204_v2  ;;  %1913 = vmatprep.mubr.msk.bf16.mxu1 (!%p193_p9), %vm2205_vm0, %v2204_v2  ;;  %v2321_v8 = vpack.c.bf16 (!%p193_p9), %v240_v5, %v239_v4  ;;  %v230_v33 = vld [vmem:[%s2655_s1] sm:$0xff] (!%p193_p9)  ;;  %v231_v34 = vld [vmem:[%s2655_s1 + $0x8] sm:$0xff] (!%p193_p9)  ;;  %s218_s10 = sand.u32 (!%p193_p9), 1, %s2194_s19   ;;  %s1840_s13 = sshll.u32 (!%p193_p9), %s2260_s22, 11 }
  0x10   : > { %1906 = vmatpush3.bf16.msra.mxu0 (!%p193_p9), %v2295_v3  ;;  %v2462_v38 = vpack.c.bf16 (!%p193_p9), %v231_v34, %v230_v33  ;;  %v233_v41 = vld [vmem:[%s2657_s3] sm:$0xff] (!%p193_p9)  ;;  %v234_v42 = vld [vmem:[%s2657_s3 + $0x8] sm:$0xff] (!%p193_p9)  ;;  %s1768_s11 = sshll.u32 (!%p193_p9), %s218_s10, 7  ;;  %s2613_s22 = scalar_lea.sflag (!%p193_p9), [#allocation3], %s218_s10 }
  0x11   : > { %1917 = vmatprep.subr.bf16.mxu0 (!%p193_p9), %v2204_v2  ;;  %v2475_v46 = vpack.c.bf16 (!%p193_p9), %v234_v42, %v233_v41  ;;  %s2554_s12 = scalar_lea.vmem (!%p193_p9), [#allocation2], %s1768_s11  ;;  %s2206_s25 = smov (!%p193_p9), [#allocation2]  }
  0x12   : > { %s2144_s26 = sshll.u32 (!%p193_p9), %s2206_s25, 4  ;;  %s2145_s26 = int_to_ptr.vmem [resolvable:$false] %s2144_s26 }
  0x13   : > { %s2146_s30 = scalar_lea.vmem (!%p193_p9), %s2145_s26, 4096 }
  0x15   : > { %s2667_s9 = smov (!%p222_p10, %s1769_s9), 15 }
  0x16   : > { %s1838_s14 = sshll.u32 %s2667_s9, 4 }
  0x17   : > { %s2313_s17 = scalar_lea.vmem %s2654_s0, %s1838_s14  ;;  %s1702_s14 = sshll.u32 %s2554_s12, 4  ;;  %s2605_s14 = int_to_ptr.vmem [resolvable:$true] %s1702_s14 }
  0x18   : > { %v2316_v6 = vld [vmem:[%s2313_s17] sm:$0xff]  ;;  %v2319_v7 = vld [vmem:[%s2313_s17 + $0x8] sm:$0xff]  ;;  %v2335_v10 = vld [vmem:[%s2313_s17 + $0x10] sm:$0xff]  ;;  %s2140_s23 = scalar_lea.vmem %s2605_s14, 2048  ;;  %p2147_p0 = scmp.lt.s32.totalorder %s2605_s14, %s2145_s26 }
  0x19   : > { %v244_v9 = vpack.c.bf16 %v2319_v7, %v2316_v6  ;;  %v2338_v11 = vld [vmem:[%s2313_s17 + $0x18] sm:$0xff]  ;;  %v2353_v13 = vld [vmem:[%s2313_s17 + $0x20] sm:$0xff]  ;;  %v2356_v14 = vld [vmem:[%s2313_s17 + $0x28] sm:$0xff]  ;;  %p2141_p11 = scmp.ne.s32.totalorder %s2605_s14, %s2140_s23  ;;  %p2148_p1 = scmp.lt.s32.totalorder %s2146_s30, %s2140_s23 }
  0x1a   : > { %v430_v12 = vpack.c.bf16 %v2338_v11, %v2335_v10  ;;  %v610_v15 = vpack.c.bf16 %v2356_v14, %v2353_v13  ;;  %v2371_v16 = vld [vmem:[%s2313_s17 + $0x30] sm:$0xff]  ;;  %v2374_v17 = vld [vmem:[%s2313_s17 + $0x38] sm:$0xff]  ;;  %v2389_v19 = vld [vmem:[%s2313_s17 + $0x40] sm:$0xff] }
  0x1b   : > { %1908 = vmatmul.mubr.msk.bf16.vlgmr.msra.gmra.mrb[0].mxu0 %vm245_vm1, %v244_v9  ;;  %v790_v18 = vpack.c.bf16 %v2374_v17, %v2371_v16  ;;  %v2392_v20 = vld [vmem:[%s2313_s17 + $0x48] sm:$0xff]  ;;  %v2407_v22 = vld [vmem:[%s2313_s17 + $0x50] sm:$0xff]  ;;  %v2410_v23 = vld [vmem:[%s2313_s17 + $0x58] sm:$0xff]  ;;  %p2142_p12 = pnand %p2141_p11, %p2277_p5  ;;  %p2149_p2 = por %p2148_p1, %p2147_p0 }
  0x1c   : > { %1918 = vmatpush3.bf16.msra.mxu0 %v2321_v8  ;;  %1919 = vmatprep.mubr.msk.bf16.mxu0 %vm2205_vm0, %v2204_v2  ;;  %v970_v21 = vpack.c.bf16 %v2392_v20, %v2389_v19  ;;  %v1150_v24 = vpack.c.bf16 %v2410_v23, %v2407_v22  ;;  %v2425_v25 = vld [vmem:[%s2313_s17 + $0x60] sm:$0xff]  ;;  %v2428_v26 = vld [vmem:[%s2313_s17 + $0x68] sm:$0xff]  ;;  %v2443_v28 = vld [vmem:[%s2313_s17 + $0x70] sm:$0xff] }
  0x1d   : > { %1929 = vmatprep.subr.bf16.mxu0 %v2204_v2  ;;  %v1330_v27 = vpack.c.bf16 %v2428_v26, %v2425_v25  ;;  %v2446_v29 = vld [vmem:[%s2313_s17 + $0x78] sm:$0xff]  ;;  %s2603_s17 = scalar_lea.hbm %s2659_s5, %s1840_s13  ;;  %p2143_p13 = pneg %p2142_p12 }
  0x1e   : > { %v1510_v30 = vpack.c.bf16 %v2446_v29, %v2443_v28 }
  0x1f   : > { %p2150_p3 = pnand %p2149_p2, %p2143_p13 }
  0x23   : > { %1920 = vmatmul.mubr.msk.bf16.vlgmr.msra.gmra.mrb[4].mxu0 %vm245_vm1, %v244_v9 }
  0x24   : > { %1930 = vmatpush3.bf16.msra.mxu0 %v2295_v3  ;;  %1931 = vmatprep.mubr.msk.bf16.mxu0 %vm2205_vm0, %v2204_v2 }
  0x25   : > { %1941 = vmatprep.subr.bf16.mxu0 %v2204_v2 }
  0x2b   : > { %1932 = vmatmul.mubr.msk.bf16.vlgmr.msra.gmra.mrb[8].mxu0 %vm245_vm1, %v430_v12 }
  0x2c   : > { %1942 = vmatpush3.bf16.msra.mxu0 %v2321_v8  ;;  %1943 = vmatprep.mubr.msk.bf16.mxu0 %vm2205_vm0, %v2204_v2 }
  0x2d   : > { %1953 = vmatprep.subr.bf16.mxu0 %v2204_v2 }
  0x33   : > { %1944 = vmatmul.mubr.msk.bf16.vlgmr.msra.gmra.mrb[12].mxu0 %vm245_vm1, %v430_v12 }
  0x34   : > { %1954 = vmatpush3.bf16.msra.mxu0 %v2295_v3  ;;  %1955 = vmatprep.mubr.msk.bf16.mxu0 %vm2205_vm0, %v2204_v2 }
  0x35   : > { %1965 = vmatprep.subr.bf16.mxu0 %v2204_v2 }
  0x3b   : > { %1956 = vmatmul.mubr.msk.bf16.vlgmr.msra.gmra.mrb[16].mxu0 %vm245_vm1, %v610_v15 }
  0x3c   : > { %1966 = vmatpush3.bf16.msra.mxu0 %v2321_v8  ;;  %1967 = vmatprep.mubr.msk.bf16.mxu0 %vm2205_vm0, %v2204_v2 }
  0x3d   : > { %1977 = vmatprep.subr.bf16.mxu0 %v2204_v2 }
  0x43   : > { %1968 = vmatmul.mubr.msk.bf16.vlgmr.msra.gmra.mrb[20].mxu0 %vm245_vm1, %v610_v15 }
  0x44   : > { %1978 = vmatpush3.bf16.msra.mxu0 %v2295_v3  ;;  %1979 = vmatprep.mubr.msk.bf16.mxu0 %vm2205_vm0, %v2204_v2 }
  0x45   : > { %1989 = vmatprep.subr.bf16.mxu0 %v2204_v2 }
  0x4b   : > { %1980 = vmatmul.mubr.msk.bf16.vlgmr.msra.gmra.mrb[24].mxu0 %vm245_vm1, %v790_v18 }
  0x4c   : > { %1990 = vmatpush3.bf16.msra.mxu0 %v2321_v8  ;;  %1991 = vmatprep.mubr.msk.bf16.mxu0 %vm2205_vm0, %v2204_v2 }
  0x4d   : > { %2001 = vmatprep.subr.bf16.mxu0 %v2204_v2 }
  0x53   : > { %1992 = vmatmul.mubr.msk.bf16.vlgmr.msra.gmra.mrb[28].mxu0 %vm245_vm1, %v790_v18 }
  0x54   : > { %2002 = vmatpush3.bf16.msra.mxu0 %v2295_v3  ;;  %2003 = vmatprep.mubr.msk.bf16.mxu0 %vm2205_vm0, %v2204_v2 }
  0x55   : > { %2013 = vmatprep.subr.bf16.mxu0 %v2204_v2 }
  0x5b   : > { %2004 = vmatmul.mubr.msk.bf16.vlgmr.msra.gmra.mrb[32].mxu0 %vm245_vm1, %v970_v21 }
  0x5c   : > { %2014 = vmatpush3.bf16.msra.mxu0 %v2321_v8  ;;  %2015 = vmatprep.mubr.msk.bf16.mxu0 %vm2205_vm0, %v2204_v2 }
  0x5d   : > { %2025 = vmatprep.subr.bf16.mxu0 %v2204_v2 }
  0x63   : > { %2016 = vmatmul.mubr.msk.bf16.vlgmr.msra.gmra.mrb[36].mxu0 %vm245_vm1, %v970_v21 }
  0x64   : > { %2026 = vmatpush3.bf16.msra.mxu0 %v2295_v3  ;;  %2027 = vmatprep.mubr.msk.bf16.mxu0 %vm2205_vm0, %v2204_v2 }
  0x65   : > { %2037 = vmatprep.subr.bf16.mxu0 %v2204_v2 }
  0x6b   : > { %2028 = vmatmul.mubr.msk.bf16.vlgmr.msra.gmra.mrb[40].mxu0 %vm245_vm1, %v1150_v24 }
  0x6c   : > { %2038 = vmatpush3.bf16.msra.mxu0 %v2321_v8  ;;  %2039 = vmatprep.mubr.msk.bf16.mxu0 %vm2205_vm0, %v2204_v2 }
  0x6d   : > { %2049 = vmatprep.subr.bf16.mxu0 %v2204_v2 }
  0x73   : > { %2040 = vmatmul.mubr.msk.bf16.vlgmr.msra.gmra.mrb[44].mxu0 %vm245_vm1, %v1150_v24 }
  0x74   : > { %2050 = vmatpush3.bf16.msra.mxu0 %v2295_v3  ;;  %2051 = vmatprep.mubr.msk.bf16.mxu0 %vm2205_vm0, %v2204_v2 }
  0x75   : > { %2061 = vmatprep.subr.bf16.mxu0 %v2204_v2 }
  0x7b   : > { %2052 = vmatmul.mubr.msk.bf16.vlgmr.msra.gmra.mrb[48].mxu0 %vm245_vm1, %v1330_v27 }
  0x7c   : > { %2062 = vmatpush3.bf16.msra.mxu0 %v2321_v8  ;;  %2063 = vmatprep.mubr.msk.bf16.mxu0 %vm2205_vm0, %v2204_v2 }
  0x7d   : > { %2073 = vmatprep.subr.bf16.mxu0 %v2204_v2 }
  0x83   : > { %2064 = vmatmul.mubr.msk.bf16.vlgmr.msra.gmra.mrb[52].mxu0 %vm245_vm1, %v1330_v27 }
  0x84   : > { %2074 = vmatpush3.bf16.msra.mxu0 %v2295_v3  ;;  %2075 = vmatprep.mubr.msk.bf16.mxu0 %vm2205_vm0, %v2204_v2 }
  0x85   : > { %2085 = vmatprep.subr.bf16.mxu0 %v2204_v2 }
  0x8b   : > { %2076 = vmatmul.mubr.msk.bf16.vlgmr.msra.gmra.mrb[56].mxu0 %vm245_vm1, %v1510_v30 }
  0x8c   : > { %2086 = vmatpush3.bf16.msra.mxu0 %v2321_v8  ;;  %2087 = vmatprep.mubr.msk.bf16.mxu0 %vm2205_vm0, %v2204_v2 }
  0x93   : > { %2088 = vmatmul.mubr.msk.bf16.vlgmr.msra.gmra.mrb[60].mxu0 %vm245_vm1, %v1510_v30 }
  0xee   : > { %v283_v31 = vpop.f32.mrb[0].mxu0 }
  0xef   : > { %v1909_v32 = vpop.f32.mrb[1].mxu0 }
  0xf0   : > { %v286_v35 = vpop.f32.mrb[2].mxu0 }
  0xf1   : > { %v290_v36 = vpack.c.bf16 %v286_v35, %v283_v31  ;;  %v1910_v37 = vpop.f32.mrb[3].mxu0 }
  0xf3   : > { %1912 = vmatpush3.bf16.msra.mxu1 %v290_v36 }
  0xf4   : > { %1923 = vmatprep.subr.bf16.mxu1 %v2204_v2 }
  0xf6   : > { %1914 = vmatmul.mubr.msk.bf16.vlgmr.msra.gmra.mrb[0].mxu1 %vm245_vm1, %v2462_v38  ;;  %v371_v39 = vpop.f32.mrb[4].mxu0 }
  0xf7   : > { %v1921_v40 = vpop.f32.mrb[5].mxu0  ;;  %1925 = vmatprep.mubr.msk.bf16.mxu1 %vm2205_vm0, %v2204_v2 }
  0xf8   : > { %v374_v43 = vpop.f32.mrb[6].mxu0 }
  0xf9   : > { %v378_v44 = vpack.c.bf16 %v374_v43, %v371_v39  ;;  %v1922_v45 = vpop.f32.mrb[7].mxu0 }
  0xfb   : > { %1924 = vmatpush3.bf16.msra.mxu1 %v378_v44 }
  0xfc   : > { %1935 = vmatprep.subr.bf16.mxu1 %v2204_v2 }
  0xfe   : > { %1926 = vmatmul.mubr.msk.bf16.vlgmr.msra.gmra.mrb[4].mxu1 %vm245_vm1, %v2475_v46  ;;  %v468_v47 = vpop.f32.mrb[8].mxu0 }
  0xff   : > { %v1933_v48 = vpop.f32.mrb[9].mxu0  ;;  %1937 = vmatprep.mubr.msk.bf16.mxu1 %vm2205_vm0, %v2204_v2 }
 0x100   : > { %v471_v49 = vpop.f32.mrb[10].mxu0 }
 0x101   : > { %v475_v50 = vpack.c.bf16 %v471_v49, %v468_v47  ;;  %v1934_v51 = vpop.f32.mrb[11].mxu0 }
 0x103   : > { %1936 = vmatpush3.bf16.msra.mxu1 %v475_v50 }
 0x104   : > { %1947 = vmatprep.subr.bf16.mxu1 %v2204_v2 }
 0x106   : > { %1938 = vmatmul.mubr.msk.bf16.vlgmr.msra.gmra.mrb[8].mxu1 %vm245_vm1, %v2462_v38  ;;  %v553_v52 = vpop.f32.mrb[12].mxu0 }
 0x107   : > { %v1945_v53 = vpop.f32.mrb[13].mxu0  ;;  %1949 = vmatprep.mubr.msk.bf16.mxu1 %vm2205_vm0, %v2204_v2 }
 0x108   : > { %v556_v54 = vpop.f32.mrb[14].mxu0 }
 0x109   : > { %v560_v55 = vpack.c.bf16 %v556_v54, %v553_v52  ;;  %v1946_v56 = vpop.f32.mrb[15].mxu0 }
 0x10b   : > { %1948 = vmatpush3.bf16.msra.mxu1 %v560_v55 }
 0x10c   : > { %1959 = vmatprep.subr.bf16.mxu1 %v2204_v2 }
 0x10e   : > { %1950 = vmatmul.mubr.msk.bf16.vlgmr.msra.gmra.mrb[12].mxu1 %vm245_vm1, %v2475_v46  ;;  %v648_v57 = vpop.f32.mrb[16].mxu0 }
 0x10f   : > { %v1957_v58 = vpop.f32.mrb[17].mxu0  ;;  %1961 = vmatprep.mubr.msk.bf16.mxu1 %vm2205_vm0, %v2204_v2 }
 0x110   : > { %v651_v59 = vpop.f32.mrb[18].mxu0 }
 0x111   : > { %v655_v60 = vpack.c.bf16 %v651_v59, %v648_v57  ;;  %v1958_v61 = vpop.f32.mrb[19].mxu0 }
 0x113   : > { %1960 = vmatpush3.bf16.msra.mxu1 %v655_v60 }
 0x114   : > { %1971 = vmatprep.subr.bf16.mxu1 %v2204_v2 }
 0x116   : > { %1962 = vmatmul.mubr.msk.bf16.vlgmr.msra.gmra.mrb[16].mxu1 %vm245_vm1, %v2462_v38  ;;  %v733_v62 = vpop.f32.mrb[20].mxu0 }
 0x117   : > { %v1969_v63 = vpop.f32.mrb[21].mxu0  ;;  %1973 = vmatprep.mubr.msk.bf16.mxu1 %vm2205_vm0, %v2204_v2 }
 0x118   : > { %v736_v0 = vpop.f32.mrb[22].mxu0 }
 0x119   : > { %v740_v1 = vpack.c.bf16 %v736_v0, %v733_v62  ;;  %v1970_v3 = vpop.f32.mrb[23].mxu0 }
 0x11b   : > { %1972 = vmatpush3.bf16.msra.mxu1 %v740_v1 }
 0x11c   : > { %1983 = vmatprep.subr.bf16.mxu1 %v2204_v2 }
 0x11e   : > { %1974 = vmatmul.mubr.msk.bf16.vlgmr.msra.gmra.mrb[20].mxu1 %vm245_vm1, %v2475_v46  ;;  %v828_v4 = vpop.f32.mrb[24].mxu0 }
 0x11f   : > { %v1981_v5 = vpop.f32.mrb[25].mxu0  ;;  %1985 = vmatprep.mubr.msk.bf16.mxu1 %vm2205_vm0, %v2204_v2 }
 0x120   : > { %v831_v8 = vpop.f32.mrb[26].mxu0 }
 0x121   : > { %v835_v9 = vpack.c.bf16 %v831_v8, %v828_v4  ;;  %v1982_v12 = vpop.f32.mrb[27].mxu0 }
 0x123   : > { %1984 = vmatpush3.bf16.msra.mxu1 %v835_v9 }
 0x124   : > { %1995 = vmatprep.subr.bf16.mxu1 %v2204_v2 }
 0x126   : > { %1986 = vmatmul.mubr.msk.bf16.vlgmr.msra.gmra.mrb[24].mxu1 %vm245_vm1, %v2462_v38  ;;  %v913_v15 = vpop.f32.mrb[28].mxu0 }
 0x127   : > { %v1993_v18 = vpop.f32.mrb[29].mxu0  ;;  %1997 = vmatprep.mubr.msk.bf16.mxu1 %vm2205_vm0, %v2204_v2 }
 0x128   : > { %v916_v21 = vpop.f32.mrb[30].mxu0 }
 0x129   : > { %v920_v24 = vpack.c.bf16 %v916_v21, %v913_v15  ;;  %v1994_v27 = vpop.f32.mrb[31].mxu0 }
 0x12b   : > { %1996 = vmatpush3.bf16.msra.mxu1 %v920_v24 }
 0x12c   : > { %2007 = vmatprep.subr.bf16.mxu1 %v2204_v2 }
 0x12e   : > { %1998 = vmatmul.mubr.msk.bf16.vlgmr.msra.gmra.mrb[28].mxu1 %vm245_vm1, %v2475_v46  ;;  %v1008_v30 = vpop.f32.mrb[32].mxu0 }
 0x12f   : > { %v2005_v31 = vpop.f32.mrb[33].mxu0  ;;  %2009 = vmatprep.mubr.msk.bf16.mxu1 %vm2205_vm0, %v2204_v2 }
 0x130   : > { %v1011_v32 = vpop.f32.mrb[34].mxu0 }
 0x131   : > { %v1015_v33 = vpack.c.bf16 %v1011_v32, %v1008_v30  ;;  %v2006_v34 = vpop.f32.mrb[35].mxu0 }
 0x133   : > { %2008 = vmatpush3.bf16.msra.mxu1 %v1015_v33 }
 0x134   : > { %2019 = vmatprep.subr.bf16.mxu1 %v2204_v2 }
 0x136   : > { %2010 = vmatmul.mubr.msk.bf16.vlgmr.msra.gmra.mrb[32].mxu1 %vm245_vm1, %v2462_v38  ;;  %v1093_v35 = vpop.f32.mrb[36].mxu0 }
 0x137   : > { %v2017_v36 = vpop.f32.mrb[37].mxu0  ;;  %2021 = vmatprep.mubr.msk.bf16.mxu1 %vm2205_vm0, %v2204_v2 }
 0x138   : > { %v1096_v37 = vpop.f32.mrb[38].mxu0 }
 0x139   : > { %v1100_v39 = vpack.c.bf16 %v1096_v37, %v1093_v35  ;;  %v2018_v40 = vpop.f32.mrb[39].mxu0 }
 0x13b   : > { %2020 = vmatpush3.bf16.msra.mxu1 %v1100_v39 }
 0x13c   : > { %2031 = vmatprep.subr.bf16.mxu1 %v2204_v2 }
 0x13e   : > { %2022 = vmatmul.mubr.msk.bf16.vlgmr.msra.gmra.mrb[36].mxu1 %vm245_vm1, %v2475_v46  ;;  %v1188_v41 = vpop.f32.mrb[40].mxu0 }
 0x13f   : > { %v2029_v42 = vpop.f32.mrb[41].mxu0  ;;  %2033 = vmatprep.mubr.msk.bf16.mxu1 %vm2205_vm0, %v2204_v2 }
 0x140   : > { %v1191_v43 = vpop.f32.mrb[42].mxu0 }
 0x141   : > { %v1195_v44 = vpack.c.bf16 %v1191_v43, %v1188_v41  ;;  %v2030_v45 = vpop.f32.mrb[43].mxu0 }
 0x143   : > { %2032 = vmatpush3.bf16.msra.mxu1 %v1195_v44 }
 0x144   : > { %2043 = vmatprep.subr.bf16.mxu1 %v2204_v2 }
 0x146   : > { %2034 = vmatmul.mubr.msk.bf16.vlgmr.msra.gmra.mrb[40].mxu1 %vm245_vm1, %v2462_v38  ;;  %v1273_v47 = vpop.f32.mrb[44].mxu0 }
 0x147   : > { %v2041_v48 = vpop.f32.mrb[45].mxu0  ;;  %2045 = vmatprep.mubr.msk.bf16.mxu1 %vm2205_vm0, %v2204_v2 }
 0x148   : > { %v1276_v49 = vpop.f32.mrb[46].mxu0 }
 0x149   : > { %v1280_v50 = vpack.c.bf16 %v1276_v49, %v1273_v47  ;;  %v2042_v51 = vpop.f32.mrb[47].mxu0 }
 0x14b   : > { %2044 = vmatpush3.bf16.msra.mxu1 %v1280_v50 }
 0x14c   : > { %2055 = vmatprep.subr.bf16.mxu1 %v2204_v2 }
 0x14e   : > { %2046 = vmatmul.mubr.msk.bf16.vlgmr.msra.gmra.mrb[44].mxu1 %vm245_vm1, %v2475_v46  ;;  %v1368_v52 = vpop.f32.mrb[48].mxu0 }
 0x14f   : > { %v2053_v53 = vpop.f32.mrb[49].mxu0  ;;  %2057 = vmatprep.mubr.msk.bf16.mxu1 %vm2205_vm0, %v2204_v2 }
 0x150   : > { %v1371_v54 = vpop.f32.mrb[50].mxu0 }
 0x151   : > { %v1375_v55 = vpack.c.bf16 %v1371_v54, %v1368_v52  ;;  %v2054_v56 = vpop.f32.mrb[51].mxu0 }
 0x153   : > { %2056 = vmatpush3.bf16.msra.mxu1 %v1375_v55 }
 0x154   : > { %2067 = vmatprep.subr.bf16.mxu1 %v2204_v2 }
 0x156   : > { %2058 = vmatmul.mubr.msk.bf16.vlgmr.msra.gmra.mrb[48].mxu1 %vm245_vm1, %v2462_v38  ;;  %v1453_v57 = vpop.f32.mrb[52].mxu0 }
 0x157   : > { %v2065_v58 = vpop.f32.mrb[53].mxu0  ;;  %2069 = vmatprep.mubr.msk.bf16.mxu1 %vm2205_vm0, %v2204_v2 }
 0x158   : > { %v1456_v59 = vpop.f32.mrb[54].mxu0 }
 0x159   : > { %v1460_v60 = vpack.c.bf16 %v1456_v59, %v1453_v57  ;;  %v2066_v61 = vpop.f32.mrb[55].mxu0 }
 0x15b   : > { %2068 = vmatpush3.bf16.msra.mxu1 %v1460_v60 }
 0x15c   : > { %2079 = vmatprep.subr.bf16.mxu1 %v2204_v2 }
 0x15e   : > { %2070 = vmatmul.mubr.msk.bf16.vlgmr.msra.gmra.mrb[52].mxu1 %vm245_vm1, %v2475_v46  ;;  %v1548_v62 = vpop.f32.mrb[56].mxu0 }
 0x15f   : > { %v2077_v63 = vpop.f32.mrb[57].mxu0  ;;  %2081 = vmatprep.mubr.msk.bf16.mxu1 %vm2205_vm0, %v2204_v2 }
 0x160   : > { %v1551_v0 = vpop.f32.mrb[58].mxu0 }
 0x161   : > { %v1555_v1 = vpack.c.bf16 %v1551_v0, %v1548_v62  ;;  %v2078_v3 = vpop.f32.mrb[59].mxu0 }
 0x163   : > { %2080 = vmatpush3.bf16.msra.mxu1 %v1555_v1 }
 0x164   : > { %2091 = vmatprep.subr.bf16.mxu1 %v2204_v2 }
 0x166   : > { %2082 = vmatmul.mubr.msk.bf16.vlgmr.msra.gmra.mrb[56].mxu1 %vm245_vm1, %v2462_v38  ;;  %v1633_v4 = vpop.f32.mrb[60].mxu0 }
 0x167   : > { %v2089_v5 = vpop.f32.mrb[61].mxu0  ;;  %2093 = vmatprep.mubr.msk.bf16.mxu1 %vm2205_vm0, %v2204_v2 }
 0x168   : > { %v1636_v8 = vpop.f32.mrb[62].mxu0 }
 0x169   : > { %v1640_v9 = vpack.c.bf16 %v1636_v8, %v1633_v4  ;;  %v2090_v12 = vpop.f32.mrb[63].mxu0 }
 0x16b   : > { %2092 = vmatpush3.bf16.msra.mxu1 %v1640_v9 }
 0x16e   : > { %2094 = vmatmul.mubr.msk.bf16.vlgmr.msra.gmra.mrb[60].mxu1 %vm245_vm1, %v2475_v46 }
 0x1c9   : > { %v328_v15 = vpop.f32.mrb[0].mxu1 }
 0x1ca   : > { %v1915_v18 = vpop.f32.mrb[1].mxu1  ;;  %v335_v38 = vmax.f32 %v2316_v6, %v328_v15 }
 0x1cb   : > { %v331_v21 = vpop.f32.mrb[2].mxu1 }
 0x1cc   : > { %v1916_v24 = vpop.f32.mrb[3].mxu1  ;;  %v336_v30 = vmax.f32 %v2319_v7, %v331_v21 }
 0x1d1   : > { %v416_v27 = vpop.f32.mrb[4].mxu1 }
 0x1d2   : > { %v423_v2 = vmax.f32 %v335_v38, %v416_v27  ;;  %v1927_v31 = vpop.f32.mrb[5].mxu1 }
 0x1d3   : > { %v419_v32 = vpop.f32.mrb[6].mxu1 }
 0x1d4   : > { %425 = vst.msk [vmem:[%s2554_s12] sm:$0xff] %vm245_vm1, %v423_v2  ;;  %v424_v46 = vmax.f32 %v336_v30, %v419_v32  ;;  %v1928_v33 = vpop.f32.mrb[7].mxu1 }
 0x1d6   : > { %426 = vst.msk [vmem:[%s2554_s12 + $0x8] sm:$0xff] %vm245_vm1, %v424_v46 }
 0x1d9   : > { %v510_v34 = vpop.f32.mrb[8].mxu1 }
 0x1da   : > { %v1939_v6 = vpop.f32.mrb[9].mxu1  ;;  %v517_v7 = vmax.f32 %v2335_v10, %v510_v34 }
 0x1db   : > { %v513_v35 = vpop.f32.mrb[10].mxu1 }
 0x1dc   : > { %v1940_v36 = vpop.f32.mrb[11].mxu1  ;;  %v518_v39 = vmax.f32 %v2338_v11, %v513_v35 }
 0x1e1   : > { %v595_v37 = vpop.f32.mrb[12].mxu1 }
 0x1e2   : > { %v602_v40 = vmax.f32 %v517_v7, %v595_v37  ;;  %v1951_v41 = vpop.f32.mrb[13].mxu1 }
 0x1e3   : > { %v598_v42 = vpop.f32.mrb[14].mxu1 }
 0x1e4   : > { %1782 = vst.msk [vmem:[%s2554_s12 + $0x10] sm:$0xff] %vm245_vm1, %v602_v40  ;;  %v603_v43 = vmax.f32 %v518_v39, %v598_v42  ;;  %v1952_v44 = vpop.f32.mrb[15].mxu1 }
 0x1e6   : > { %1783 = vst.msk [vmem:[%s2554_s12 + $0x18] sm:$0xff] %vm245_vm1, %v603_v43 }
 0x1e9   : > { %v690_v45 = vpop.f32.mrb[16].mxu1 }
 0x1ea   : > { %v1963_v47 = vpop.f32.mrb[17].mxu1  ;;  %v697_v10 = vmax.f32 %v2353_v13, %v690_v45 }
 0x1eb   : > { %v693_v48 = vpop.f32.mrb[18].mxu1 }
 0x1ec   : > { %v1964_v49 = vpop.f32.mrb[19].mxu1  ;;  %v698_v11 = vmax.f32 %v2356_v14, %v693_v48 }
 0x1f1   : > { %v775_v50 = vpop.f32.mrb[20].mxu1 }
 0x1f2   : > { %v782_v51 = vmax.f32 %v697_v10, %v775_v50  ;;  %v1975_v52 = vpop.f32.mrb[21].mxu1 }
 0x1f3   : > { %v778_v53 = vpop.f32.mrb[22].mxu1 }
 0x1f4   : > { %1790 = vst.msk [vmem:[%s2554_s12 + $0x20] sm:$0xff] %vm245_vm1, %v782_v51  ;;  %v783_v54 = vmax.f32 %v698_v11, %v778_v53  ;;  %v1976_v55 = vpop.f32.mrb[23].mxu1 }
 0x1f6   : > { %1791 = vst.msk [vmem:[%s2554_s12 + $0x28] sm:$0xff] %vm245_vm1, %v783_v54 }
 0x1f9   : > { %v870_v56 = vpop.f32.mrb[24].mxu1 }
 0x1fa   : > { %v1987_v57 = vpop.f32.mrb[25].mxu1  ;;  %v877_v13 = vmax.f32 %v2371_v16, %v870_v56 }
 0x1fb   : > { %v873_v58 = vpop.f32.mrb[26].mxu1 }
 0x1fc   : > { %v1988_v59 = vpop.f32.mrb[27].mxu1  ;;  %v878_v14 = vmax.f32 %v2374_v17, %v873_v58 }
 0x201   : > { %v955_v60 = vpop.f32.mrb[28].mxu1 }
 0x202   : > { %v962_v61 = vmax.f32 %v877_v13, %v955_v60  ;;  %v1999_v62 = vpop.f32.mrb[29].mxu1 }
 0x203   : > { %v958_v63 = vpop.f32.mrb[30].mxu1 }
 0x204   : > { %1798 = vst.msk [vmem:[%s2554_s12 + $0x30] sm:$0xff] %vm245_vm1, %v962_v61  ;;  %v963_v0 = vmax.f32 %v878_v14, %v958_v63  ;;  %v2000_v1 = vpop.f32.mrb[31].mxu1 }
 0x206   : > { %1799 = vst.msk [vmem:[%s2554_s12 + $0x38] sm:$0xff] %vm245_vm1, %v963_v0 }
 0x209   : > { %v1050_v3 = vpop.f32.mrb[32].mxu1 }
 0x20a   : > { %v2011_v4 = vpop.f32.mrb[33].mxu1  ;;  %v1057_v16 = vmax.f32 %v2389_v19, %v1050_v3 }
 0x20b   : > { %v1053_v5 = vpop.f32.mrb[34].mxu1 }
 0x20c   : > { %v2012_v8 = vpop.f32.mrb[35].mxu1  ;;  %v1058_v17 = vmax.f32 %v2392_v20, %v1053_v5 }
 0x211   : > { %v1135_v9 = vpop.f32.mrb[36].mxu1 }
 0x212   : > { %v1142_v12 = vmax.f32 %v1057_v16, %v1135_v9  ;;  %v2023_v15 = vpop.f32.mrb[37].mxu1 }
 0x213   : > { %v1138_v18 = vpop.f32.mrb[38].mxu1 }
 0x214   : > { %1806 = vst.msk [vmem:[%s2554_s12 + $0x40] sm:$0xff] %vm245_vm1, %v1142_v12  ;;  %v1143_v21 = vmax.f32 %v1058_v17, %v1138_v18  ;;  %v2024_v24 = vpop.f32.mrb[39].mxu1 }
 0x216   : > { %1807 = vst.msk [vmem:[%s2554_s12 + $0x48] sm:$0xff] %vm245_vm1, %v1143_v21 }
 0x219   : > { %v1230_v38 = vpop.f32.mrb[40].mxu1 }
 0x21a   : > { %v2035_v27 = vpop.f32.mrb[41].mxu1  ;;  %v1237_v19 = vmax.f32 %v2407_v22, %v1230_v38 }
 0x21b   : > { %v1233_v30 = vpop.f32.mrb[42].mxu1 }
 0x21c   : > { %v2036_v2 = vpop.f32.mrb[43].mxu1  ;;  %v1238_v20 = vmax.f32 %v2410_v23, %v1233_v30 }
 0x221   : > { %v1315_v31 = vpop.f32.mrb[44].mxu1 }
 0x222   : > { %v1322_v32 = vmax.f32 %v1237_v19, %v1315_v31  ;;  %v2047_v46 = vpop.f32.mrb[45].mxu1 }
 0x223   : > { %v1318_v33 = vpop.f32.mrb[46].mxu1 }
 0x224   : > { %1814 = vst.msk [vmem:[%s2554_s12 + $0x50] sm:$0xff] %vm245_vm1, %v1322_v32  ;;  %v1323_v34 = vmax.f32 %v1238_v20, %v1318_v33  ;;  %v2048_v6 = vpop.f32.mrb[47].mxu1 }
 0x226   : > { %1815 = vst.msk [vmem:[%s2554_s12 + $0x58] sm:$0xff] %vm245_vm1, %v1323_v34 }
 0x229   : > { %v1410_v35 = vpop.f32.mrb[48].mxu1 }
 0x22a   : > { %v2059_v36 = vpop.f32.mrb[49].mxu1  ;;  %v1417_v22 = vmax.f32 %v2425_v25, %v1410_v35 }
 0x22b   : > { %v1413_v7 = vpop.f32.mrb[50].mxu1 }
 0x22c   : > { %v2060_v37 = vpop.f32.mrb[51].mxu1  ;;  %v1418_v39 = vmax.f32 %v2428_v26, %v1413_v7 }
 0x231   : > { %v1495_v23 = vpop.f32.mrb[52].mxu1 }
 0x232   : > { %v1502_v40 = vmax.f32 %v1417_v22, %v1495_v23  ;;  %v2071_v41 = vpop.f32.mrb[53].mxu1 }
 0x233   : > { %v1498_v42 = vpop.f32.mrb[54].mxu1 }
 0x234   : > { %1822 = vst.msk [vmem:[%s2554_s12 + $0x60] sm:$0xff] %vm245_vm1, %v1502_v40  ;;  %v1503_v43 = vmax.f32 %v1418_v39, %v1498_v42  ;;  %v2072_v44 = vpop.f32.mrb[55].mxu1 }
 0x236   : > { %1823 = vst.msk [vmem:[%s2554_s12 + $0x68] sm:$0xff] %vm245_vm1, %v1503_v43 }
 0x239   : > { %v1590_v45 = vpop.f32.mrb[56].mxu1 }
 0x23a   : > { %v2083_v47 = vpop.f32.mrb[57].mxu1  ;;  %v1597_v49 = vmax.f32 %v2443_v28, %v1590_v45 }
 0x23b   : > { %v1593_v48 = vpop.f32.mrb[58].mxu1 }
 0x23c   : > { %v2084_v25 = vpop.f32.mrb[59].mxu1  ;;  %v1598_v10 = vmax.f32 %v2446_v29, %v1593_v48 }
 0x241   : > { %v1675_v26 = vpop.f32.mrb[60].mxu1 }
 0x242   : > { %v1682_v50 = vmax.f32 %v1597_v49, %v1675_v26  ;;  %v2095_v11 = vpop.f32.mrb[61].mxu1 }
 0x243   : > { %v1678_v51 = vpop.f32.mrb[62].mxu1 }
 0x244   : > { %1830 = vst.msk [vmem:[%s2554_s12 + $0x70] sm:$0xff] %vm245_vm1, %v1682_v50  ;;  %v1683_v28 = vmax.f32 %v1598_v10, %v1678_v51  ;;  %v2096_v52 = vpop.f32.mrb[63].mxu1 }
 0x246   : > { %1831 = vst.msk [vmem:[%s2554_s12 + $0x78] sm:$0xff] %vm245_vm1, %v1683_v28 }
 0x247   : > { %2153 = shalt.err (!%p2150_p3)
}
 0x248   : > { %s2154_s6 = scalar_lea.hbm %s2603_s17, 2048  ;;  %s2158_s9 = scalar_lea.hbm %s2659_s5, 4096 }
 0x249   : > { %p2155_p4 = scmp.ne.s32.totalorder %s2603_s17, %s2154_s6  ;;  %p2159_p9 = scmp.lt.u32.totalorder %s2603_s17, %s2659_s5 }
 0x24a   : > { %p2160_p10 = scmp.lt.u32.totalorder %s2158_s9, %s2154_s6  ;;  %p2162_p12 = scmp.lt.u32.totalorder %s2154_s6, %s2603_s17 }
 0x24b   : > { %p2156_p7 = pnand %p2155_p4, %p2277_p5 }
 0x24c   : > { %p2161_p11 = por %p2160_p10, %p2159_p9 }
 0x24d   : > { %p2157_p8 = pneg %p2156_p7 }
 0x24e   : > { %p2163_p13 = por %p2162_p12, %p2161_p11 }
 0x250   : > { %p2164_p0 = pnand %p2163_p13, %p2157_p8 }
 0x252   : > { %2167 = shalt.err (!%p2164_p0)
}
 0x253   : > { %s2207_s12 = smov 128   ;;  %s2208_s13 = smov 8  }
 0x254   : > { %2097 = dma.vmem_to_hbm [thread:$0]  (%p2277_p5), %s2605_s14, 2048, %s2603_s17, %s2613_s22, %s2207_s12, %s2207_s12, %s2208_s13  }
 0x255 PF: > { %p2103_p1 = scmp.ge.s32.totalorder %s2202_s21, 2  ;;  %s1717_s15 = sand.u32 1, %s2190_s18  }
 0x256   : > { %s1718_s16 = scalar_lea.sflag [#allocation3], %s1717_s15 }
 0x257   : > { %p2100_p2 = pnand %p2103_p1, %p2281_p6 }
 0x259   : > { %2185 = dma.done.wait (!%p2100_p2), %s1718_s16, 2048  }
 0x25a   : > { %2187 = vsyncadd (!%p2100_p2), %s1718_s16, 4294965248  ;;  %p15_p3 = scmp.ge.s32.totalorder %s2264_s24, 4   ;;  %s2662_s18 = smov %s2194_s19 }
 0x25b   : > { %s2663_s19 = smov %s2198_s20  ;;  %s2664_s20 = smov %s2275_s27 }
 0x25c   : > { %s2665_s21 = smov %s2264_s24  ;;  %17 = sbr.rel (!%p15_p3) target bundleno = 3 (0x3), region = 89 }
 0x263   :  { %1723 = vsyncpa [#allocation3], 1 }
 0x264   :  { %1725 = vsyncpa [#allocation3 + $0x1], 1 }

</bundles_post_ra>
